<compile_context>
chip_gen: v6e
topology: v6e:2x2x1
jax: 0.10.0
libtpu: 0.0.40
codegen_flags: <defaults>
</compile_context>

<pallas_src>
import math

import jax
import jax.numpy as jnp
import numpy as np
from jax import lax
from jax.experimental import pallas as pl
from jax.experimental.pallas import tpu as pltpu


def _round_up(x, m):
    return ((x + m - 1) // m) * m


# ----------------------------- Pallas kernel --------------------------------
def _hpe_kernel(params_ref, idx_ref, gid_tab_ref, gty_tab_ref, row_tab_ref,
                col_tab_ref, gamma_ref, beta_ref, out_ref):
    """Fused gather + mixer + combine + LayerNorm over one row-tile.

    params_ref (SMEM, (3,)): [c_grid*input_weight, c_grid*position_weight, c_pos]
    idx_ref:   [TS, 4] int32 packed indices (grid_id, grid_type, row, col)
    *_tab_ref: VMEM-resident embedding tables (row counts padded to multiples of 8;
               row/col tables pre-expanded to full D width so pos = row_g + col_g)
    gamma_ref/beta_ref: [1, D] LayerNorm affine params
    out_ref:   [TS, D]
    """
    a = params_ref[0]   # c_grid * input_weight
    b = params_ref[1]   # c_grid * position_weight
    c = params_ref[2]   # c_pos

    idx = idx_ref[...]                       # (TS, 4) int32
    ts = idx.shape[0]

    def gather(tab_ref, col):
        tab = tab_ref[...]                   # (R, D) float32, tiny
        r = tab.shape[0]
        sel = idx[:, col:col + 1]            # (TS, 1)
        onehot = (sel == lax.broadcasted_iota(jnp.int32, (ts, r), 1)
                  ).astype(jnp.float32)      # (TS, R)
        return jnp.dot(onehot, tab, preferred_element_type=jnp.float32)

    x1 = gather(gid_tab_ref, 0)              # grid_id embeddings   (TS, D)
    x2 = gather(gty_tab_ref, 1)              # grid_type embeddings (TS, D)
    pos = gather(row_tab_ref, 2) + gather(col_tab_ref, 3)   # 2D sinusoidal pos

    # F.normalize(x, p=2, dim=-1): x / max(||x||, 1e-12) == x * rsqrt(max(ss, 1e-24))
    ss1 = jnp.sum(x1 * x1, axis=-1, keepdims=True)
    ss2 = jnp.sum(x2 * x2, axis=-1, keepdims=True)
    n1 = x1 * lax.rsqrt(jnp.maximum(ss1, jnp.float32(1e-24)))
    n2 = x2 * lax.rsqrt(jnp.maximum(ss2, jnp.float32(1e-24)))

    # softmax(combine_weights) folded into the mixer scalars on the host:
    # pe = c_grid*(w_in*n1 + w_pos*n2) + c_pos*pos == a*n1 + b*n2 + c*pos
    pe = a * n1 + b * n2 + c * pos

    # LayerNorm (eps = 1e-5, biased variance), elementwise affine
    mean = jnp.mean(pe, axis=-1, keepdims=True)
    cen = pe - mean
    var = jnp.mean(cen * cen, axis=-1, keepdims=True)
    y = cen * lax.rsqrt(var + jnp.float32(1e-5))
    out_ref[...] = (y * gamma_ref[...] + beta_ref[...]).astype(out_ref.dtype)


def _run_hpe_kernel(idx_all, gid_tab, gty_tab, row_tab, col_tab, params_vec,
                    gamma, beta, *, tile_rows=1024, out_dtype=jnp.float32):
    """idx_all: [N, 4] int32; tables: [R, D] f32. Returns [N, D]."""
    N = idx_all.shape[0]
    D = gid_tab.shape[1]

    # Biggest row tile that makes sense for the problem size (multiple of 8).
    tile_rows = min(tile_rows, _round_up(N, 8))
    N_pad = _round_up(N, tile_rows)
    if N_pad != N:
        # Only the tiny int32 index array gets padded (index 0 -> valid table row;
        # the padded output rows are sliced off below).
        idx_all = jnp.pad(idx_all, ((0, N_pad - N), (0, 0)))

    grid = (N_pad // tile_rows,)
    out_spec = pl.BlockSpec((tile_rows, D), lambda i: (i, 0))
    idx_spec = pl.BlockSpec((tile_rows, 4), lambda i: (i, 0))

    def full_spec(arr):
        # Whole (tiny) array resident; same block every step -> no re-DMA.
        return pl.BlockSpec(arr.shape, lambda i: (0, 0))

    n_table_rows = (gid_tab.shape[0] + gty_tab.shape[0]
                    + row_tab.shape[0] + col_tab.shape[0])
    cost = pl.CostEstimate(
        flops=int(N_pad) * (2 * n_table_rows * D + 16 * D),
        transcendentals=3 * int(N_pad),
        bytes_accessed=int(N_pad * 4 * 4 + N_pad * D * 4
                           + n_table_rows * D * 4 + 2 * D * 4),
    )

    out = pl.pallas_call(
        _hpe_kernel,
        out_shape=jax.ShapeDtypeStruct((N_pad, D), out_dtype),
        grid=grid,
        in_specs=[
            pl.BlockSpec(memory_space=pltpu.MemorySpace.SMEM),  # folded scalars
            idx_spec,                                           # packed indices
            full_spec(gid_tab),
            full_spec(gty_tab),
            full_spec(row_tab),
            full_spec(col_tab),
            full_spec(gamma),
            full_spec(beta),
        ],
        out_specs=out_spec,
        compiler_params=pltpu.CompilerParams(
            dimension_semantics=("parallel",),
            vmem_limit_bytes=32 * 1024 * 1024,
        ),
        cost_estimate=cost,
    )(params_vec, idx_all, gid_tab, gty_tab, row_tab, col_tab, gamma, beta)
    return out[:N]


# ----------------------------- Parameter setup -------------------------------
def make_sinusoidal_table(dim, max_positions):
    """FixedAbsolutePositionalEmbedding table, [max_positions, dim]."""
    inv_freq = 1.0 / (10000.0 ** (np.arange(0, dim, 2, dtype=np.float32) / dim))
    t = np.arange(max_positions, dtype=np.float32)
    sinusoid = np.einsum("i,j->ij", t, inv_freq)
    emb = np.concatenate([np.sin(sinusoid), np.cos(sinusoid)], axis=-1)
    if dim % 2 == 1:
        emb = np.concatenate([emb, np.zeros((max_positions, 1), np.float32)], axis=-1)
    return jnp.asarray(emb, jnp.float32)


def xavier_normal(key, shape):
    fan_out, fan_in = shape  # torch convention for 2D: fan_in = size(1), fan_out = size(0)
    std = math.sqrt(2.0 / (fan_in + fan_out))
    return std * jax.random.normal(key, shape, dtype=jnp.float32)


def init_params(key, d_model, max_grids=10, max_grid_types=2, max_rows=30, max_cols=30):
    k1, k2 = jax.random.split(key)
    params = {
        "grid_id_table": xavier_normal(k1, (max_grids, d_model)),
        "grid_type_table": xavier_normal(k2, (max_grid_types, d_model)),
        "row_table": make_sinusoidal_table(d_model // 2, max_rows),
        "col_table": make_sinusoidal_table(d_model // 2, max_cols),
        # grid_mixer ('weighted_sum'): scalar params, init to 1.0
        "input_weight": jnp.float32(1.0),
        "position_weight": jnp.float32(1.0),
        # combine_weights = ones(4) / 4
        "combine_weights": jnp.ones((4,), jnp.float32) / 4.0,
        # LayerNorm affine
        "ln_gamma": jnp.ones((1, d_model), jnp.float32),
        "ln_beta": jnp.zeros((1, d_model), jnp.float32),
    }
    return params


# ----------------------------- Forward wrapper --------------------------------
def hierarchical_position_encoding(params, grid_ids, grid_types, row_positions,
                                   col_positions, *, tile_rows=1024):
    """Inputs: int32 [B, S] index tensors.  Returns float32 [B, S, d_model]."""
    B, S = grid_ids.shape
    D = params["grid_id_table"].shape[1]
    half = D // 2

    def pad_rows(t, m=8):
        r = t.shape[0]
        rp = _round_up(r, m)
        return jnp.pad(t, ((0, rp - r), (0, 0))) if rp != r else t

    # Tiny host-side table prep (O(table) work, not O(N*D)):
    gid_tab = pad_rows(params["grid_id_table"])
    gty_tab = pad_rows(params["grid_type_table"])
    # Expand half-width sinusoidal tables to full D so pos = row_tab[row] + col_tab[col]
    # (replaces the in-kernel concat with an add).
    row_tab = pad_rows(jnp.pad(params["row_table"], ((0, 0), (0, D - half))))
    col_tab = pad_rows(jnp.pad(params["col_table"], ((0, 0), (half, 0))))

    # Fold softmax(combine_weights) into the mixer scalars (scalar-only host work).
    nw = jax.nn.softmax(params["combine_weights"], axis=0)
    params_vec = jnp.stack([
        nw[0] * params["input_weight"],
        nw[0] * params["position_weight"],
        nw[1],
    ]).astype(jnp.float32)

    # Pack the four index streams into one [N, 4] int32 array.
    idx_all = jnp.stack(
        [grid_ids, grid_types, row_positions, col_positions], axis=-1
    ).reshape(B * S, 4).astype(jnp.int32)

    out = _run_hpe_kernel(idx_all, gid_tab, gty_tab, row_tab, col_tab,
                          params_vec, params["ln_gamma"], params["ln_beta"],
                          tile_rows=tile_rows)
    # TODO(synk): dropout is identity here (eval mode); no Pallas-side RNG needed.
    return out.reshape(B, S, D)


# ----------------------------- Pure-JAX reference -----------------------------
def reference_forward(params, grid_ids, grid_types, row_positions, col_positions):
    gid = jnp.take(params["grid_id_table"], grid_ids, axis=0)
    gty = jnp.take(params["grid_type_table"], grid_types, axis=0)
    row = jnp.take(params["row_table"], row_positions, axis=0)
    col = jnp.take(params["col_table"], col_positions, axis=0)
    pos = jnp.concatenate([row, col], axis=-1)

    def l2norm(x):
        return x / jnp.maximum(jnp.linalg.norm(x, axis=-1, keepdims=True), 1e-12)

    grid_emb = params["input_weight"] * l2norm(gid) + params["position_weight"] * l2norm(gty)
    nw = jax.nn.softmax(params["combine_weights"], axis=0)
    pe = nw[0] * grid_emb + nw[1] * pos
    mean = jnp.mean(pe, axis=-1, keepdims=True)
    var = jnp.mean((pe - mean) ** 2, axis=-1, keepdims=True)
    y = (pe - mean) / jnp.sqrt(var + 1e-5)
    return y * params["ln_gamma"][0] + params["ln_beta"][0]


# ----------------------------------- main --------------------------------------
if __name__ == "__main__":
    d_model = 32
    B, S = 2, 8
    max_grids, max_grid_types, max_rows, max_cols = 10, 2, 30, 30

    key = jax.random.PRNGKey(0)
    kp, k1, k2, k3, k4 = jax.random.split(key, 5)

    params = init_params(kp, d_model, max_grids, max_grid_types, max_rows, max_cols)

    grid_ids = jax.random.randint(k1, (B, S), 0, max_grids, dtype=jnp.int32)
    grid_types = jax.random.randint(k2, (B, S), 0, max_grid_types, dtype=jnp.int32)
    row_positions = jax.random.randint(k3, (B, S), 0, max_rows, dtype=jnp.int32)
    col_positions = jax.random.randint(k4, (B, S), 0, max_cols, dtype=jnp.int32)

    out = hierarchical_position_encoding(params, grid_ids, grid_types,
                                         row_positions, col_positions)
    out = jax.block_until_ready(out)

    ref = reference_forward(params, grid_ids, grid_types, row_positions, col_positions)
    ref = jax.block_until_ready(ref)

    assert out.shape == (B, S, d_model), out.shape
    np.testing.assert_allclose(np.asarray(out), np.asarray(ref), rtol=1e-5, atol=1e-5)
    print("KERNEL_OK")
</pallas_src>

<mosaic_0001>
module attributes {stable_mosaic.version = 11 : i64} {
  func.func @_hpe_kernel(%arg0: i32, %arg1: memref<3xf32, #tpu.memory_space<smem>>, %arg2: memref<16x4xi32, #tpu.memory_space<vmem>>, %arg3: memref<16x32xf32, #tpu.memory_space<vmem>>, %arg4: memref<8x32xf32, #tpu.memory_space<vmem>>, %arg5: memref<32x32xf32, #tpu.memory_space<vmem>>, %arg6: memref<32x32xf32, #tpu.memory_space<vmem>>, %arg7: memref<1x32xf32, #tpu.memory_space<vmem>>, %arg8: memref<1x32xf32, #tpu.memory_space<vmem>>, %arg9: memref<16x32xf32, #tpu.memory_space<vmem>>) attributes {dimension_semantics = [#tpu.dimension_semantics<parallel>], iteration_bounds = array<i64: 1>, scalar_prefetch = 0 : i64, scratch_operands = 0 : i64, tpu.core_type = #tpu.core_type<tc>, window_params = [{transform_indices = @transform_0, window_bounds = array<i64: 3>}, {transform_indices = @transform_1, window_bounds = array<i64: 16, 4>}, {pipeline_mode = #tpu.pipeline_mode<synchronous>, transform_indices = @transform_2, window_bounds = array<i64: 16, 32>}, {pipeline_mode = #tpu.pipeline_mode<synchronous>, transform_indices = @transform_3, window_bounds = array<i64: 8, 32>}, {pipeline_mode = #tpu.pipeline_mode<synchronous>, transform_indices = @transform_4, window_bounds = array<i64: 32, 32>}, {pipeline_mode = #tpu.pipeline_mode<synchronous>, transform_indices = @transform_5, window_bounds = array<i64: 32, 32>}, {pipeline_mode = #tpu.pipeline_mode<synchronous>, transform_indices = @transform_6, window_bounds = array<i64: 1, 32>}, {pipeline_mode = #tpu.pipeline_mode<synchronous>, transform_indices = @transform_7, window_bounds = array<i64: 1, 32>}, {transform_indices = @transform_8, window_bounds = array<i64: 16, 32>}]} {
    %c0 = arith.constant 0 : index
    %0 = memref.load %arg1[%c0] : memref<3xf32, #tpu.memory_space<smem>>
    %c1 = arith.constant 1 : index
    %1 = memref.load %arg1[%c1] : memref<3xf32, #tpu.memory_space<smem>>
    %c2 = arith.constant 2 : index
    %2 = memref.load %arg1[%c2] : memref<3xf32, #tpu.memory_space<smem>>
    %c0_0 = arith.constant 0 : index
    %c0_1 = arith.constant 0 : index
    %3 = vector.load %arg2[%c0_0, %c0_1] : memref<16x4xi32, #tpu.memory_space<vmem>>, vector<16x4xi32>
    %c0_2 = arith.constant 0 : index
    %c0_3 = arith.constant 0 : index
    %4 = vector.load %arg3[%c0_2, %c0_3] : memref<16x32xf32, #tpu.memory_space<vmem>>, vector<16x32xf32>
    %5 = vector.extract_strided_slice %3 {offsets = [0, 0], sizes = [16, 1], strides = [1, 1]} : vector<16x4xi32> to vector<16x1xi32>
    %6 = tpu.iota {dimensions = array<i32: 1>} : vector<16x16xi32>
    %7 = vector.broadcast %5 : vector<16x1xi32> to vector<16x16xi32>
    %8 = arith.cmpi eq, %7, %6 : vector<16x16xi32>
    %9 = arith.extui %8 : vector<16x16xi1> to vector<16x16xi32>
    %10 = arith.sitofp %9 : vector<16x16xi32> to vector<16x16xf32>
    %cst = arith.constant dense<0.000000e+00> : vector<16x32xf32>
    %11 = tpu.matmul %10, %4, %cst {dimension_numbers = #tpu.dot_dimension_numbers<[1], [0], [0], [1], [0, 0, 1, 1], [], []>} : vector<16x16xf32>, vector<16x32xf32>, vector<16x32xf32> -> vector<16x32xf32>
    %c0_4 = arith.constant 0 : index
    %c0_5 = arith.constant 0 : index
    %12 = vector.load %arg4[%c0_4, %c0_5] : memref<8x32xf32, #tpu.memory_space<vmem>>, vector<8x32xf32>
    %13 = vector.extract_strided_slice %3 {offsets = [0, 1], sizes = [16, 1], strides = [1, 1]} : vector<16x4xi32> to vector<16x1xi32>
    %14 = tpu.iota {dimensions = array<i32: 1>} : vector<16x8xi32>
    %15 = vector.broadcast %13 : vector<16x1xi32> to vector<16x8xi32>
    %16 = arith.cmpi eq, %15, %14 : vector<16x8xi32>
    %17 = arith.extui %16 : vector<16x8xi1> to vector<16x8xi32>
    %18 = arith.sitofp %17 : vector<16x8xi32> to vector<16x8xf32>
    %cst_6 = arith.constant dense<0.000000e+00> : vector<16x32xf32>
    %19 = tpu.matmul %18, %12, %cst_6 {dimension_numbers = #tpu.dot_dimension_numbers<[1], [0], [0], [1], [0, 0, 1, 1], [], []>} : vector<16x8xf32>, vector<8x32xf32>, vector<16x32xf32> -> vector<16x32xf32>
    %c0_7 = arith.constant 0 : index
    %c0_8 = arith.constant 0 : index
    %20 = vector.load %arg5[%c0_7, %c0_8] : memref<32x32xf32, #tpu.memory_space<vmem>>, vector<32x32xf32>
    %21 = vector.extract_strided_slice %3 {offsets = [0, 2], sizes = [16, 1], strides = [1, 1]} : vector<16x4xi32> to vector<16x1xi32>
    %22 = tpu.iota {dimensions = array<i32: 1>} : vector<16x32xi32>
    %23 = vector.broadcast %21 : vector<16x1xi32> to vector<16x32xi32>
    %24 = arith.cmpi eq, %23, %22 : vector<16x32xi32>
    %25 = arith.extui %24 : vector<16x32xi1> to vector<16x32xi32>
    %26 = arith.sitofp %25 : vector<16x32xi32> to vector<16x32xf32>
    %cst_9 = arith.constant dense<0.000000e+00> : vector<16x32xf32>
    %27 = tpu.matmul %26, %20, %cst_9 {dimension_numbers = #tpu.dot_dimension_numbers<[1], [0], [0], [1], [0, 0, 1, 1], [], []>} : vector<16x32xf32>, vector<32x32xf32>, vector<16x32xf32> -> vector<16x32xf32>
    %c0_10 = arith.constant 0 : index
    %c0_11 = arith.constant 0 : index
    %28 = vector.load %arg6[%c0_10, %c0_11] : memref<32x32xf32, #tpu.memory_space<vmem>>, vector<32x32xf32>
    %29 = vector.extract_strided_slice %3 {offsets = [0, 3], sizes = [16, 1], strides = [1, 1]} : vector<16x4xi32> to vector<16x1xi32>
    %30 = tpu.iota {dimensions = array<i32: 1>} : vector<16x32xi32>
    %31 = vector.broadcast %29 : vector<16x1xi32> to vector<16x32xi32>
    %32 = arith.cmpi eq, %31, %30 : vector<16x32xi32>
    %33 = arith.extui %32 : vector<16x32xi1> to vector<16x32xi32>
    %34 = arith.sitofp %33 : vector<16x32xi32> to vector<16x32xf32>
    %cst_12 = arith.constant dense<0.000000e+00> : vector<16x32xf32>
    %35 = tpu.matmul %34, %28, %cst_12 {dimension_numbers = #tpu.dot_dimension_numbers<[1], [0], [0], [1], [0, 0, 1, 1], [], []>} : vector<16x32xf32>, vector<32x32xf32>, vector<16x32xf32> -> vector<16x32xf32>
    %36 = arith.addf %27, %35 : vector<16x32xf32>
    %37 = arith.mulf %11, %11 : vector<16x32xf32>
    %cst_13 = arith.constant dense<0.000000e+00> : vector<16xf32>
    %38 = vector.multi_reduction <add>, %37, %cst_13 [1] : vector<16x32xf32> to vector<16xf32>
    %39 = vector.shape_cast %38 : vector<16xf32> to vector<16x1xf32>
    %40 = arith.mulf %19, %19 : vector<16x32xf32>
    %cst_14 = arith.constant dense<0.000000e+00> : vector<16xf32>
    %41 = vector.multi_reduction <add>, %40, %cst_14 [1] : vector<16x32xf32> to vector<16xf32>
    %42 = vector.shape_cast %41 : vector<16xf32> to vector<16x1xf32>
    %cst_15 = arith.constant 1.000000e-24 : f32
    %43 = vector.broadcast %cst_15 : f32 to vector<16x1xf32>
    %44 = arith.maximumf %39, %43 : vector<16x1xf32>
    %45 = math.rsqrt %44 : vector<16x1xf32>
    %46 = vector.broadcast %45 : vector<16x1xf32> to vector<16x32xf32>
    %47 = arith.mulf %11, %46 : vector<16x32xf32>
    %cst_16 = arith.constant 1.000000e-24 : f32
    %48 = vector.broadcast %cst_16 : f32 to vector<16x1xf32>
    %49 = arith.maximumf %42, %48 : vector<16x1xf32>
    %50 = math.rsqrt %49 : vector<16x1xf32>
    %51 = vector.broadcast %50 : vector<16x1xf32> to vector<16x32xf32>
    %52 = arith.mulf %19, %51 : vector<16x32xf32>
    %53 = vector.broadcast %0 : f32 to vector<16x32xf32>
    %54 = arith.mulf %53, %47 : vector<16x32xf32>
    %55 = vector.broadcast %1 : f32 to vector<16x32xf32>
    %56 = arith.mulf %55, %52 : vector<16x32xf32>
    %57 = arith.addf %54, %56 : vector<16x32xf32>
    %58 = vector.broadcast %2 : f32 to vector<16x32xf32>
    %59 = arith.mulf %58, %36 : vector<16x32xf32>
    %60 = arith.addf %57, %59 : vector<16x32xf32>
    %cst_17 = arith.constant dense<0.000000e+00> : vector<16xf32>
    %61 = vector.multi_reduction <add>, %60, %cst_17 [1] : vector<16x32xf32> to vector<16xf32>
    %62 = vector.shape_cast %61 : vector<16xf32> to vector<16x1xf32>
    %cst_18 = arith.constant 3.200000e+01 : f32
    %63 = vector.broadcast %cst_18 : f32 to vector<16x1xf32>
    %64 = arith.divf %62, %63 : vector<16x1xf32>
    %65 = vector.broadcast %64 : vector<16x1xf32> to vector<16x32xf32>
    %66 = arith.subf %60, %65 : vector<16x32xf32>
    %67 = arith.mulf %66, %66 : vector<16x32xf32>
    %cst_19 = arith.constant dense<0.000000e+00> : vector<16xf32>
    %68 = vector.multi_reduction <add>, %67, %cst_19 [1] : vector<16x32xf32> to vector<16xf32>
    %69 = vector.shape_cast %68 : vector<16xf32> to vector<16x1xf32>
    %cst_20 = arith.constant 3.200000e+01 : f32
    %70 = vector.broadcast %cst_20 : f32 to vector<16x1xf32>
    %71 = arith.divf %69, %70 : vector<16x1xf32>
    %cst_21 = arith.constant 9.99999974E-6 : f32
    %72 = vector.broadcast %cst_21 : f32 to vector<16x1xf32>
    %73 = arith.addf %71, %72 : vector<16x1xf32>
    %74 = math.rsqrt %73 : vector<16x1xf32>
    %75 = vector.broadcast %74 : vector<16x1xf32> to vector<16x32xf32>
    %76 = arith.mulf %66, %75 : vector<16x32xf32>
    %c0_22 = arith.constant 0 : index
    %c0_23 = arith.constant 0 : index
    %77 = vector.load %arg7[%c0_22, %c0_23] : memref<1x32xf32, #tpu.memory_space<vmem>>, vector<1x32xf32>
    %78 = vector.broadcast %77 : vector<1x32xf32> to vector<16x32xf32>
    %79 = arith.mulf %76, %78 : vector<16x32xf32>
    %c0_24 = arith.constant 0 : index
    %c0_25 = arith.constant 0 : index
    %80 = vector.load %arg8[%c0_24, %c0_25] : memref<1x32xf32, #tpu.memory_space<vmem>>, vector<1x32xf32>
    %81 = vector.broadcast %80 : vector<1x32xf32> to vector<16x32xf32>
    %82 = arith.addf %79, %81 : vector<16x32xf32>
    %c0_26 = arith.constant 0 : index
    %c0_27 = arith.constant 0 : index
    %83 = vector.load %arg9[%c0_26, %c0_27] : memref<16x32xf32, #tpu.memory_space<vmem>>, vector<16x32xf32>
    tpu.vector_store %arg9[%c0_26, %c0_27], %82 {strides = array<i32>} : memref<16x32xf32, #tpu.memory_space<vmem>>, vector<16x32xf32>,
    return
  }
  func.func @transform_0(%arg0: i32) -> i32 {
    %c0_i32 = arith.constant 0 : i32
    %c0_i32_0 = arith.constant 0 : i32
    return %c0_i32 : i32
  }
  func.func @transform_1(%arg0: i32) -> (i32, i32) {
    %c0_i32 = arith.constant 0 : i32
    %c0_i32_0 = arith.constant 0 : i32
    return %arg0, %c0_i32 : i32, i32
  }
  func.func @transform_2(%arg0: i32) -> (i32, i32) {
    %c0_i32 = arith.constant 0 : i32
    %c0_i32_0 = arith.constant 0 : i32
    %c0_i32_1 = arith.constant 0 : i32
    return %c0_i32, %c0_i32_0 : i32, i32
  }
  func.func @transform_3(%arg0: i32) -> (i32, i32) {
    %c0_i32 = arith.constant 0 : i32
    %c0_i32_0 = arith.constant 0 : i32
    %c0_i32_1 = arith.constant 0 : i32
    return %c0_i32, %c0_i32_0 : i32, i32
  }
  func.func @transform_4(%arg0: i32) -> (i32, i32) {
    %c0_i32 = arith.constant 0 : i32
    %c0_i32_0 = arith.constant 0 : i32
    %c0_i32_1 = arith.constant 0 : i32
    return %c0_i32, %c0_i32_0 : i32, i32
  }
  func.func @transform_5(%arg0: i32) -> (i32, i32) {
    %c0_i32 = arith.constant 0 : i32
    %c0_i32_0 = arith.constant 0 : i32
    %c0_i32_1 = arith.constant 0 : i32
    return %c0_i32, %c0_i32_0 : i32, i32
  }
  func.func @transform_6(%arg0: i32) -> (i32, i32) {
    %c0_i32 = arith.constant 0 : i32
    %c0_i32_0 = arith.constant 0 : i32
    %c0_i32_1 = arith.constant 0 : i32
    return %c0_i32, %c0_i32_0 : i32, i32
  }
  func.func @transform_7(%arg0: i32) -> (i32, i32) {
    %c0_i32 = arith.constant 0 : i32
    %c0_i32_0 = arith.constant 0 : i32
    %c0_i32_1 = arith.constant 0 : i32
    return %c0_i32, %c0_i32_0 : i32, i32
  }
  func.func @transform_8(%arg0: i32) -> (i32, i32) {
    %c0_i32 = arith.constant 0 : i32
    %c0_i32_0 = arith.constant 0 : i32
    return %arg0, %c0_i32 : i32, i32
  }
}

</mosaic_0001>

<bundles_post_ra>
// kernel: tpu_custom_call.1
= control target key start
LH: loop header
LB: loop body
LE: loop exit
PB: predicated region body
PF: predicated region fallthrough
CT: control target
= control target key end

     0   :  { %13 = vsyncpa [#allocation5], 0  ;;  %s866_s0 = inlined_call_operand.vmem [shape: f32[3], index: 0, kind: input, shape index: {}]   ;;  %s867_s1 = inlined_call_operand.vmem [shape: s32[16,4], index: 1, kind: input, shape index: {}]   ;;  %s868_s2 = inlined_call_operand.vmem [shape: f32[16,32], index: 2, kind: input, shape index: {}]   ;;  %s869_s3 = inlined_call_operand.vmem [shape: f32[8,32], index: 3, kind: input, shape index: {}]   ;;  %s870_s4 = inlined_call_operand.hbm [shape: f32[32,32], index: 4, kind: input, shape index: {}]   ;;  %s871_s5 = inlined_call_operand.hbm [shape: f32[32,32], index: 5, kind: input, shape index: {}]   ;;  %s872_s6 = inlined_call_operand.vmem [shape: f32[1,32], index: 6, kind: input, shape index: {}]   ;;  %s873_s7 = inlined_call_operand.vmem [shape: f32[1,32], index: 7, kind: input, shape index: {}]   ;;  %s874_s8 = inlined_call_operand.hbm [shape: f32[16,32], index: 8, kind: output, shape index: {}]  }
   0x1   :  { %14 = vsyncpa [#allocation3], 0 }
   0x2   :  { %15 = vsyncpa [#allocation8], 0 }
   0x3   :  { %16 = vsyncpa [#allocation4], 0  ;;  %s23_s29 = sshll.u32 %s866_s0, 4  ;;  %s24_s29 = int_to_ptr.vmem [resolvable:$true] %s23_s29 }
   0x4   :  { %s674_s30 = scalar_lea.vmem %s24_s29, 16  ;;  %p679_p1 = scmp.lt.s32.totalorder %s24_s29, %s24_s29 }
   0x5   :  { %p675_p0 = scmp.ne.s32.totalorder %s24_s29, %s674_s30  ;;  %p680_p2 = scmp.lt.s32.totalorder %s674_s30, %s674_s30 }
   0x7   :  { %p681_p3 = por %p680_p2, %p679_p1 }
   0x9   :  { %p682_p4 = pnand %p681_p3, %p675_p0 }
   0xb   :  { %685 = shalt.err (!%p682_p4)
}
   0xc   :  { %s754_s9 = smov [#allocation2]   ;;  %s755_s10 = smov [#allocation6]  }
   0xd   :  { %26 = dma.vmem_to_smem %s24_s29, 16, %s754_s9, [#allocation5]  }
   0xe   :  { %s38_s11 = sshll.u32 %s755_s10, 4  ;;  %s39_s11 = int_to_ptr.vmem [resolvable:$true] %s38_s11 }
   0xf   :  { %s694_s12 = scalar_lea.vmem %s39_s11, 512  ;;  %p699_p6 = scmp.lt.s32.totalorder %s39_s11, %s39_s11 }
  0x10   :  { %p695_p5 = scmp.ne.s32.totalorder %s39_s11, %s694_s12  ;;  %p700_p7 = scmp.lt.s32.totalorder %s694_s12, %s694_s12 }
  0x12   :  { %p701_p8 = por %p700_p7, %p699_p6 }
  0x14   :  { %p702_p9 = pnand %p701_p8, %p695_p5 }
  0x16   :  { %705 = shalt.err (!%p702_p9)
}
  0x17   :  { %s756_s0 = smov 128   ;;  %s757_s13 = smov 8  }
  0x18   :  { %44 = dma.hbm_to_vmem [thread:$0]  %s870_s4, 512, %s39_s11, [#allocation3], %s756_s0, %s756_s0, %s757_s13  }
  0x19   :  { %s758_s16 = smov [#allocation7]  }
  0x1a   :  { %s50_s17 = sshll.u32 %s758_s16, 4  ;;  %s51_s17 = int_to_ptr.vmem [resolvable:$true] %s50_s17 }
  0x1b   :  { %s714_s18 = scalar_lea.vmem %s51_s17, 512  ;;  %p719_p11 = scmp.lt.s32.totalorder %s51_s17, %s51_s17 }
  0x1c   :  { %p715_p10 = scmp.ne.s32.totalorder %s51_s17, %s714_s18  ;;  %p720_p12 = scmp.lt.s32.totalorder %s714_s18, %s714_s18 }
  0x1e   :  { %p721_p13 = por %p720_p12, %p719_p11 }
  0x20   :  { %p722_p0 = pnand %p721_p13, %p715_p10 }
  0x22   :  { %725 = shalt.err (!%p722_p0)
}
  0x23   :  { %56 = dma.hbm_to_vmem [thread:$0]  %s871_s5, 512, %s51_s17, [#allocation8], %s756_s0, %s756_s0, %s757_s13  }
  0x24   :  { %746 = dma.done.wait [#allocation5], 16  }
  0x25   :  { %747 = vsyncadd [#allocation5], 4294967280 }
  0x26   :  { %748 = dma.done.wait [#allocation3], 512  }
  0x27   :  { %749 = vsyncadd [#allocation3], 4294966784 }
  0x28   :  { %750 = dma.done.wait [#allocation8], 512  }
  0x29   :  { %751 = vsyncadd [#allocation8], 4294966784 }
  0x2a   :  { %70 = sfence }
  0x2b   :  { %v74_v0 = vld [vmem:[%s867_s1] sm:$0xff]  ;;  %v75_v1 = vld [vmem:[%s867_s1 + $0x8] sm:$0xff]  ;;  %v759_v3 = vmov 0   ;;  %v760_v6 = vmov 1   ;;  %v288_v7 = vld [vmem:[#allocation7 + $0x18] sm:$0xff]  ;;  %v761_v9 = vmov 2   ;;  %v78_v11 = vlaneseq }
  0x2c   :  { %v77_v2 = vld [vmem:[%s868_s2 + $0x8] sm:$0xff]  ;;  %655 = vset.pattern.permute.xlu0 %v759_v3  ;;  %657 = vset.pattern.permute.xlu1 %v759_v3  ;;  %v76_v4 = vld [vmem:[%s868_s2] sm:$0xff]  ;;  %v272_v8 = vld [vmem:[#allocation6 + $0x18] sm:$0xff]  ;;  %v762_v10 = vmov 3   ;;  %vm92_vm0 = vcmask 130048   ;;  %v763_v15 = vmov 0.0  }
  0x2d   :  { %81 = vperm.xlu0 %655, %v74_v0   ;;  %84 = vperm.xlu1 %657, %v75_v1   ;;  %v174_v5 = vld [vmem:[%s869_s3] sm:$0xff]  ;;  %v79_v12 = vand.u32 127, %v78_v11  ;;  %v271_v18 = vld [vmem:[#allocation6 + $0x10] sm:$0xff]  ;;  %vm187_vm3 = vcmask 64512   ;;  %v270_v21 = vld [vmem:[#allocation6 + $0x8] sm:$0xff]  ;;  %vm301_vm6 = vcmask 261120  }
  0x2e   :  { %610 = vmatprep.subr.mxu0 %v77_v2  ;;  %617 = vmatprep.subr.mxu1 %v174_v5  ;;  %v269_v24 = vld [vmem:[#allocation6] sm:$0xff]  ;;  %v287_v25 = vld [vmem:[#allocation7 + $0x10] sm:$0xff]  ;;  %v286_v27 = vld [vmem:[#allocation7 + $0x8] sm:$0xff]  ;;  %s571_s1 = sld [smem:[#allocation2 + $0x1]]  ;;  %s764_s11 = smov [#allocation9]  }
  0x2f   :  { %611 = vmatpush3.msra.mxu0 %v77_v2  ;;  %618 = vmatpush3.msra.mxu1 %v174_v5  ;;  %v285_v31 = vld [vmem:[#allocation7] sm:$0xff]  ;;  %s71_s2 = sld [smem:[#allocation2]]  ;;  %s557_s12 = sshll.u32 %s764_s11, 4  ;;  %s558_s12 = int_to_ptr.vmem [resolvable:$true] %s557_s12 }
  0x30   :  { %612 = vmatprep.subr.mxu0 %v76_v4  ;;  %622 = vmatprep.subr.mxu1 %v288_v7  ;;  %s572_s3 = sld [smem:[#allocation2 + $0x2]]  ;;  %s726_s14 = scalar_lea.vmem %s558_s12, 256 }
  0x31   :  { %656 = vset.pattern.permute.xlu0 %v760_v6  ;;  %658 = vset.pattern.permute.xlu1 %v760_v6  ;;  %p727_p1 = scmp.ne.s32.totalorder %s558_s12, %s726_s14  ;;  %p731_p2 = scmp.lt.s32.totalorder %s558_s12, %s558_s12 }
  0x32   :  { %176 = vperm.xlu0 %656, %v74_v0   ;;  %179 = vperm.xlu1 %658, %v75_v1   ;;  %p732_p3 = scmp.lt.s32.totalorder %s726_s14, %s726_s14 }
  0x33   :  { %613 = vmatpush3.msra.mxu0 %v76_v4 }
  0x34   :  { %633 = vmatprep.subr.mxu0 %v272_v8  ;;  %p733_p4 = por %p732_p3, %p731_p2 }
  0x35   :  { %v492_v4 = vstv %s71_s2 }
  0x36   :  { %659 = vset.pattern.permute.xlu1 %v761_v9  ;;  %660 = vset.pattern.permute.xlu0 %v762_v10  ;;  %v500_v3 = vstv %s572_s3  ;;  %p734_p5 = pnand %p733_p4, %p727_p1 }
  0x37   :  { %274 = vperm.xlu1 %659, %v74_v0   ;;  %290 = vperm.xlu0 %660, %v74_v0   ;;  %v495_v0 = vstv %s571_s1 }
  0x3b   :  { %277 = vperm.xlu1 %659, %v75_v1  }
  0x3f   :  { %661 = vset.pattern.permute.xlu1 %v762_v10 }
  0x40   :  { %293 = vperm.xlu1 %661, %v75_v1  }
  0xa8   :  { %v82_v13 = vpop.permute.xlu0 %81  ;;  %v85_v14 = vpop.permute.xlu1 %84 }
  0xa9   :  { %vm86_vm1 = vcmp.eq.s32.totalorder %v82_v13, %v79_v12  ;;  %vm87_vm2 = vcmp.eq.s32.totalorder %v85_v14, %v79_v12 }
  0xaa   :  { %v574_v16 = vsel %vm87_vm2, 1.0, %v763_v15  ;;  %v573_v17 = vsel %vm86_vm1, 1.0, %v763_v15 }
  0xab   :  { %614 = vmatprep.mubr.msk.f32.mxu0 %vm92_vm0, %v573_v17 }
  0xac   :  { %615 = vmatmul.mubr.msk.f32.vlgmr.msra.gmra.mxu0 %vm92_vm0, %v574_v16 }
  0xad   :  { %v177_v19 = vpop.permute.xlu0 %176  ;;  %v180_v20 = vpop.permute.xlu1 %179  ;;  %634 = vmatpush3.msra.mxu0 %v272_v8 }
  0xae   :  { %vm181_vm4 = vcmp.eq.s32.totalorder %v177_v19, %v79_v12  ;;  %vm182_vm5 = vcmp.eq.s32.totalorder %v180_v20, %v79_v12  ;;  %635 = vmatprep.subr.mxu0 %v271_v18 }
  0xaf   :  { %v578_v22 = vsel %vm182_vm5, 1.0, %v763_v15  ;;  %v577_v23 = vsel %vm181_vm4, 1.0, %v763_v15  ;;  %636 = vmatpush3.msra.mxu0 %v271_v18 }
  0xb0   :  { %619 = vmatprep.mubr.msk.f32.mxu1 %vm187_vm3, %v577_v23  ;;  %637 = vmatprep.subr.mxu0 %v270_v21 }
  0xb1   :  { %620 = vmatmul.mubr.msk.f32.vlgmr.msra.gmra.mxu1 %vm187_vm3, %v578_v22  ;;  %638 = vmatpush3.msra.mxu0 %v270_v21 }
  0xb2   :  { %v275_v26 = vpop.permute.xlu1 %274  ;;  %623 = vmatpush3.msra.mxu1 %v288_v7  ;;  %v291_v28 = vpop.permute.xlu0 %290  ;;  %639 = vmatprep.subr.mxu0 %v269_v24 }
  0xb3   :  { %vm279_vm7 = vcmp.eq.s32.totalorder %v275_v26, %v79_v12  ;;  %624 = vmatprep.subr.mxu1 %v287_v25  ;;  %vm295_vm8 = vcmp.eq.s32.totalorder %v291_v28, %v79_v12  ;;  %640 = vmatpush3.msra.mxu0 %v269_v24 }
  0xb4   :  { %v581_v29 = vsel %vm279_vm7, 1.0, %v763_v15  ;;  %625 = vmatpush3.msra.mxu1 %v287_v25  ;;  %v583_v30 = vsel %vm295_vm8, 1.0, %v763_v15 }
  0xb5   :  { %626 = vmatprep.subr.mxu1 %v286_v27  ;;  %630 = vmatprep.mubr.msk.f32.mxu1 %vm301_vm6, %v583_v30 }
  0xb6   :  { %v278_v32 = vpop.permute.xlu1 %277  ;;  %627 = vmatpush3.msra.mxu1 %v286_v27  ;;  %641 = vmatprep.mubr.msk.f32.mxu0 %vm301_vm6, %v581_v29 }
  0xb7   :  { %vm280_vm9 = vcmp.eq.s32.totalorder %v278_v32, %v79_v12  ;;  %628 = vmatprep.subr.mxu1 %v285_v31 }
  0xb8   :  { %v582_v33 = vsel %vm280_vm9, 1.0, %v763_v15  ;;  %629 = vmatpush3.msra.mxu1 %v285_v31 }
  0xb9   :  { %642 = vmatmul.mubr.msk.f32.vlgmr.msra.gmra.mxu0 %vm301_vm6, %v582_v33 }
  0xbb   :  { %v294_v34 = vpop.permute.xlu1 %293 }
  0xbc   :  { %vm296_vm10 = vcmp.eq.s32.totalorder %v294_v34, %v79_v12 }
  0xbd   :  { %v584_v35 = vsel %vm296_vm10, 1.0, %v763_v15 }
  0xbe   :  { %631 = vmatmul.mubr.msk.f32.vlgmr.msra.gmra.mxu1 %vm301_vm6, %v584_v35 }
 0x16c   :  { %v616_v36 = vpop.f32.mrf.mxu0 }
 0x16d   :  { %v465_v37 = vmul.f32 %v616_v36, %v616_v36 }
 0x16e   :  { %v165_v38 = vpop.f32.mrf.mxu0 }
 0x16f   :  { %v464_v39 = vmul.f32 %v165_v38, %v165_v38  ;;  %v469_v40 = vsel %vm301_vm6, %v465_v37, 0.0 }
 0x170   :  { %470 = vadd.xlane.f32.xlu1 %v469_v40  ;;  %v590_v40 = vld [vmem:[%s873_s7] ss:$0 sm:$0xff] }
 0x171   :  { %v621_v41 = vpop.f32.mrf.mxu1  ;;  %v466_v42 = vsel %vm301_vm6, %v464_v39, 0.0 }
 0x172   :  { %467 = vadd.xlane.f32.xlu0 %v466_v42  ;;  %v473_v45 = vmul.f32 %v621_v41, %v621_v41 }
 0x173   :  { %v260_v43 = vpop.f32.mrf.mxu1 }
 0x174   :  { %v472_v44 = vmul.f32 %v260_v43, %v260_v43  ;;  %v477_v47 = vsel %vm301_vm6, %v473_v45, 0.0 }
 0x176   :  { %v474_v46 = vsel %vm301_vm6, %v472_v44, 0.0 }
 0x177   :  { %475 = vadd.xlane.f32.xlu0 %v474_v46 }
 0x179   :  { %v643_v57 = vpop.f32.mrf.mxu0 }
 0x17b   :  { %478 = vadd.xlane.f32.xlu0 %v477_v47  ;;  %v455_v60 = vpop.f32.mrf.mxu0 }
 0x17e   :  { %v632_v56 = vpop.f32.mrf.mxu1 }
 0x17f   :  { %v461_v9 = vadd.f32 %v643_v57, %v632_v56 }
 0x180   :  { %v374_v59 = vpop.f32.mrf.mxu1 }
 0x181   :  { %v456_v1 = vadd.f32 %v455_v60, %v374_v59  ;;  %v502_v16 = vmul.f32 %v500_v3, %v461_v9 }
 0x183   :  { %v501_v10 = vmul.f32 %v500_v3, %v456_v1 }
 0x1f9   :  { %v471_v48 = vpop.xlane.xlu1 %470 }
 0x1fa   :  { %v481_v51 = vmax.f32 %v471_v48, 1e-24 }
 0x1fb   :  { %v468_v49 = vpop.xlane.xlu0 %467 }
 0x1fc   :  { %v480_v50 = vmax.f32 %v468_v49, 1e-24 }
 0x1fe   :  { %662 = vrsqrt.f32 %v480_v50 }
 0x1ff   :  { %664 = vrsqrt.f32 %v481_v51 }
 0x200   :  { %v476_v52 = vpop.xlane.xlu0 %475 }
 0x201   :  { %v486_v53 = vmax.f32 %v476_v52, 1e-24 }
 0x203   :  { %666 = vrsqrt.f32 %v486_v53 }
 0x204   :  { %v479_v54 = vpop.xlane.xlu0 %478 }
 0x205   :  { %v487_v55 = vmax.f32 %v479_v54, 1e-24 }
 0x207   :  { %668 = vrsqrt.f32 %v487_v55 }
 0x20b   :  { %v663_v58 = vpop.eup %662 }
 0x20c   :  { %v665_v61 = vpop.eup %664  ;;  %v484_v62 = vmul.f32 %v663_v58, %v165_v38  ;;  %v589_v38 = vld [vmem:[%s872_s6] ss:$0 sm:$0xff] }
 0x20d   :  { %v485_v7 = vmul.f32 %v665_v61, %v616_v36 }
 0x20e   :  { %v493_v5 = vmul.f32 %v492_v4, %v484_v62 }
 0x20f   :  { %v494_v14 = vmul.f32 %v492_v4, %v485_v7 }
 0x210   :  { %v667_v63 = vpop.eup %666 }
 0x211   :  { %v490_v2 = vmul.f32 %v667_v63, %v260_v43 }
 0x213   :  { %v496_v6 = vmul.f32 %v495_v0, %v490_v2 }
 0x214   :  { %v669_v8 = vpop.eup %668 }
 0x215   :  { %v498_v11 = vadd.f32 %v496_v6, %v493_v5  ;;  %v491_v12 = vmul.f32 %v669_v8, %v621_v41 }
 0x217   :  { %v503_v13 = vadd.f32 %v501_v10, %v498_v11  ;;  %v497_v15 = vmul.f32 %v495_v0, %v491_v12 }
 0x219   :  { %v505_v17 = vsel %vm301_vm6, %v503_v13, 0.0  ;;  %v499_v18 = vadd.f32 %v497_v15, %v494_v14 }
 0x21a   :  { %506 = vadd.xlane.f32.xlu1 %v505_v17 }
 0x21b   :  { %v504_v19 = vadd.f32 %v502_v16, %v499_v18 }
 0x21d   :  { %v508_v20 = vsel %vm301_vm6, %v504_v19, 0.0 }
 0x21e   :  { %509 = vadd.xlane.f32.xlu0 %v508_v20 }
 0x2a3   :  { %v507_v21 = vpop.xlane.xlu1 %506 }
 0x2a4   :  { %v512_v22 = vmul.f32 0.03125, %v507_v21 }
 0x2a6   :  { %v514_v23 = vsub.f32 %v503_v13, %v512_v22 }
 0x2a7   :  { %v510_v24 = vpop.xlane.xlu0 %509 }
 0x2a8   :  { %v513_v25 = vmul.f32 0.03125, %v510_v24  ;;  %v516_v26 = vmul.f32 %v514_v23, %v514_v23 }
 0x2aa   :  { %v515_v27 = vsub.f32 %v504_v19, %v513_v25  ;;  %v518_v28 = vsel %vm301_vm6, %v516_v26, 0.0 }
 0x2ab   :  { %519 = vadd.xlane.f32.xlu1 %v518_v28 }
 0x2ac   :  { %v517_v29 = vmul.f32 %v515_v27, %v515_v27 }
 0x2ae   :  { %v521_v30 = vsel %vm301_vm6, %v517_v29, 0.0 }
 0x2af   :  { %522 = vadd.xlane.f32.xlu0 %v521_v30 }
 0x334   :  { %v520_v31 = vpop.xlane.xlu1 %519 }
 0x335   :  { %v524_v32 = vmul.f32 0.03125, %v520_v31 }
 0x337   :  { %v526_v33 = vadd.f32 1e-05, %v524_v32 }
 0x338   :  { %v523_v34 = vpop.xlane.xlu0 %522 }
 0x339   :  { %670 = vrsqrt.f32 %v526_v33  ;;  %v525_v35 = vmul.f32 0.03125, %v523_v34 }
 0x33b   :  { %v527_v36 = vadd.f32 1e-05, %v525_v35 }
 0x33d   :  { %672 = vrsqrt.f32 %v527_v36 }
 0x346   :  { %v671_v37 = vpop.eup %670 }
 0x347   :  { %v530_v39 = vmul.f32 %v671_v37, %v514_v23 }
 0x349   :  { %v539_v41 = vmul.f32 %v589_v38, %v530_v39 }
 0x34a   :  { %v673_v42 = vpop.eup %672 }
 0x34b   :  { %v531_v43 = vmul.f32 %v673_v42, %v515_v27  ;;  %v548_v44 = vadd.f32 %v590_v40, %v539_v41 }
 0x34d   :  { %v540_v45 = vmul.f32 %v589_v38, %v531_v43  ;;  %550 = vst.msk [vmem:[#allocation9] sm:$0xff] %vm301_vm6, %v548_v44 }
 0x34f   :  { %v549_v46 = vadd.f32 %v590_v40, %v540_v45 }
 0x351   :  { %551 = vst.msk [vmem:[#allocation9 + $0x8] sm:$0xff] %vm301_vm6, %v549_v46 }
 0x352   :  { %737 = shalt.err (!%p734_p5)
}
 0x353   :  { %563 = dma.vmem_to_hbm [thread:$0]  %s558_s12, 256, %s874_s8, [#allocation4], %s756_s0, %s756_s0, %s757_s13  }
 0x354   :  { %752 = dma.done.wait [#allocation4], 256  }
 0x355   :  { %753 = vsyncadd [#allocation4], 4294967040 }
 0x356   :  { %567 = vsyncpa [#allocation3], 1 }
 0x357   :  { %568 = vsyncpa [#allocation8], 1 }
 0x358   :  { %569 = vsyncpa [#allocation4], 1 }
 0x359   :  { %570 = vsyncpa [#allocation5], 1 }

</bundles_post_ra>
